<compile_context>
chip_gen: v7x
topology: tpu7x:2x2x1
jax: 0.10.0
libtpu: 0.0.40
codegen_flags: <defaults>
</compile_context>

<pallas_src>
import numpy as np
import jax
import jax.numpy as jnp
from jax import lax
from jax.experimental import pallas as pl
from jax.experimental.pallas import tpu as pltpu

IGNORE_INDEX = 20000
_NEG_BIG = -1e30  # finite "-inf" so we never form inf - inf


def _round_up(v, m):
    return ((v + m - 1) // m) * m


def _vmem_limit_bytes(needed):
    """Scoped-VMEM limit: enough for the chosen tiles, conservative cap on v7x."""
    cap = 48 * 1024 * 1024                      # safe on v7x (64 MiB physical VMEM)
    try:
        info = pltpu.get_tpu_info()
        phys = getattr(info, "vmem_capacity_bytes", None)
        if phys:
            cap = int(phys * 3 // 4)            # ~96 MiB on v5e/v6e, ~48 MiB on v7x
    except Exception:
        pass
    return int(min(max(int(needed) + (8 << 20), 32 << 20), cap))


# ----------------------------------------------------------------------------
# Kernel 1: OIM projection + per-row logsumexp via online softmax over class tiles
# ----------------------------------------------------------------------------
def _make_oim_lse_kernel(has_pad_bias):
    def body(x_ref, wT_ref, bias_ref, lse_ref, m_acc, l_acc):
        c_idx = pl.program_id(1)

        @pl.when(c_idx == 0)
        def _():
            m_acc[...] = jnp.full_like(m_acc, _NEG_BIG)
            l_acc[...] = jnp.zeros_like(l_acc)

        # bf16 MXU inputs (oim_scalar already folded into wT in the wrapper), f32 acc.
        logits = jnp.dot(x_ref[...], wT_ref[...],
                         preferred_element_type=jnp.float32)          # (rt, ct) f32
        if has_pad_bias:
            logits = logits + bias_ref[...]         # -1e30 on padded class columns

        # online softmax update (EUP exp is the expected critical slot on v6e/v7x)
        m_prev = m_acc[...]
        m_new = jnp.maximum(m_prev, jnp.max(logits, axis=1, keepdims=True))
        l_acc[...] = (l_acc[...] * jnp.exp(m_prev - m_new)
                      + jnp.sum(jnp.exp(logits - m_new), axis=1, keepdims=True))
        m_acc[...] = m_new

        @pl.when(c_idx == pl.num_programs(1) - 1)
        def _():
            lse_ref[...] = m_acc[...] + jnp.log(l_acc[...])

    if has_pad_bias:
        def kernel(x_ref, wT_ref, bias_ref, lse_ref, m_acc, l_acc):
            body(x_ref, wT_ref, bias_ref, lse_ref, m_acc, l_acc)
    else:
        def kernel(x_ref, wT_ref, lse_ref, m_acc, l_acc):
            body(x_ref, wT_ref, None, lse_ref, m_acc, l_acc)
    return kernel


def oim_cross_entropy(inputs, weights, labels, oim_scalar, *,
                      row_tile=256, class_tile=None):
    """mean_{label != ignore} CE( (x @ [lut;cq]^T) * oim_scalar, label )."""
    n, d = inputs.shape
    c = weights.shape[0]

    rt = int(min(_round_up(row_tile, 8), _round_up(max(n, 1), 8)))
    ct_full = int(_round_up(c, 128))

    def _vmem_est(ct_):
        # double-buffered bf16 x / W^T tiles + pad bias + f32 logits/exp temporaries
        return (2 * rt * d * 2 + 2 * d * ct_ * 2 + 2 * ct_ * 4
                + 2 * rt * ct_ * 4 + 6 * rt * 4)

    budget = 36 * 1024 * 1024   # conservative: leaves headroom inside v7x's 64 MiB VMEM
    if class_tile is None:
        # Prefer a single class tile so W^T is loaded once and stays VMEM-resident
        # across the whole grid (its block index never changes); shrink only if the
        # footprint would blow the budget.
        ct = ct_full
        while ct > 512 and _vmem_est(ct) > budget:
            ct = int(_round_up(ct // 2, 128))
    else:
        ct = int(min(_round_up(class_tile, 128), ct_full))

    n_pad = _round_up(max(n, 1), rt)
    c_pad = _round_up(c, ct)
    has_pad_bias = (c_pad != c)

    # Activations as bf16 (halves activation DMA); fold oim_scalar into the weight
    # prep (free: fuses into the existing pad/transpose/cast).
    xb = jnp.pad(inputs.astype(jnp.float32),
                 ((0, n_pad - n), (0, 0))).astype(jnp.bfloat16)
    w_scaled = weights.astype(jnp.float32) * jnp.float32(oim_scalar)
    wT = jnp.pad(w_scaled, ((0, c_pad - c), (0, 0))).T.astype(jnp.bfloat16)   # (D, C_pad)

    in_specs = [pl.BlockSpec((rt, d), lambda i, j: (i, 0)),
                pl.BlockSpec((d, ct), lambda i, j: (0, j))]
    operands = [xb, wT]
    if has_pad_bias:
        col = jnp.arange(c_pad, dtype=jnp.int32)
        bias = jnp.where(col < c, 0.0, _NEG_BIG).astype(jnp.float32).reshape(1, c_pad)
        in_specs.append(pl.BlockSpec((1, ct), lambda i, j: (0, j)))
        operands.append(bias)

    grid = (n_pad // rt, c_pad // ct)
    # W^T is re-streamed per row tile only when there is more than one class tile.
    wT_bytes = d * c_pad * 2 * (grid[0] if grid[1] > 1 else 1)

    lse = pl.pallas_call(
        _make_oim_lse_kernel(has_pad_bias),
        out_shape=jax.ShapeDtypeStruct((n_pad, 1), jnp.float32),
        grid=grid,
        in_specs=in_specs,
        out_specs=pl.BlockSpec((rt, 1), lambda i, j: (i, 0)),
        scratch_shapes=[pltpu.VMEM((rt, 1), jnp.float32),   # running max
                        pltpu.VMEM((rt, 1), jnp.float32)],  # running sum-exp
        compiler_params=pltpu.CompilerParams(
            dimension_semantics=("parallel", "arbitrary"),
            vmem_limit_bytes=_vmem_limit_bytes(_vmem_est(ct))),
        cost_estimate=pl.CostEstimate(
            flops=int(2 * n_pad * c_pad * d + 6 * n_pad * c_pad),
            transcendentals=int(n_pad * c_pad),
            bytes_accessed=int(n_pad * d * 2 + wT_bytes + c_pad * 4 + n_pad * 4)),
    )(*operands)

    # Target logit outside the class loop: gather W[label] once (same bf16 numerics as
    # the kernel's MXU inputs) and reduce with a single per-row dot.
    labels = labels.astype(jnp.int32)
    valid = labels != IGNORE_INDEX
    safe_lbl = jnp.clip(labels, 0, c - 1)
    w_tgt = jnp.take(w_scaled.astype(jnp.bfloat16), safe_lbl, axis=0).astype(jnp.float32)
    tgt = jnp.sum(inputs.astype(jnp.bfloat16).astype(jnp.float32) * w_tgt, axis=1)

    per_row = jnp.where(valid, lse[:n, 0] - tgt, 0.0)
    n_valid = jnp.sum(valid.astype(jnp.float32))
    # matches the reference: if every label is ignored the loss is 0.
    return jnp.sum(per_row) / jnp.maximum(n_valid, 1.0)


# ----------------------------------------------------------------------------
# Kernel 2: random Fourier features (num_f=1) + covariance penalty, streamed over N
# ----------------------------------------------------------------------------
def _make_rff_cov_kernel(w_scalar, n_rows, row_tile, mask_rows):
    half_pi = float(np.pi / 2.0)
    quarter_pi = float(np.pi / 4.0)

    def kernel(x_ref, b_ref, loss_ref, gram_acc, sum_acc):
        i = pl.program_id(0)

        @pl.when(i == 0)
        def _():
            gram_acc[...] = jnp.zeros_like(gram_acc)
            sum_acc[...] = jnp.zeros_like(sum_acc)

        x = x_ref[...]                                   # (rt, D) f32
        b = b_ref[...]                                   # (1, D)  f32
        # mid = x.view(N,D,1) @ w.T + b  ->  with num_f=1, c=1 this is x*w + b
        mid = x * w_scalar + b
        mid = mid - jnp.min(mid, axis=1, keepdims=True)
        mid = mid / jnp.maximum(jnp.max(mid, axis=1, keepdims=True), 1e-12)
        # sqrt(2)*(cos(t)+sin(t)) == 2*cos(t - pi/4): one transcendental instead of two
        z = 2.0 * jnp.cos(mid * half_pi - quarter_pi)    # (rt, D)

        if mask_rows:  # static: only emitted when N had to be padded up to the tile
            rows = i * row_tile + lax.broadcasted_iota(jnp.int32, (row_tile, 1), 0)
            z = jnp.where(rows < n_rows, z, 0.0)

        # stream the gram / row-sum accumulation (f32: cov = gram - e e^T cancels
        # catastrophically in bf16, so keep the MXU inputs f32 here)
        gram_acc[...] += lax.dot_general(z, z, (((0,), (0,)), ((), ())),
                                         preferred_element_type=jnp.float32)
        sum_acc[...] += jnp.sum(z, axis=0, keepdims=True)

        @pl.when(i == pl.num_programs(0) - 1)
        def _():
            inv_n = 1.0 / float(n_rows)
            s = sum_acc[...]
            covm = (gram_acc[...] * inv_n
                    - lax.dot_general(s, s, (((0,), (0,)), ((), ())),
                                      preferred_element_type=jnp.float32)
                    * (inv_n * inv_n))
            sq = covm * covm
            r = lax.broadcasted_iota(jnp.int32, sq.shape, 0)
            cc = lax.broadcasted_iota(jnp.int32, sq.shape, 1)
            # id_relevant_dims is all-True at init -> "sum - trace" branch
            loss_ref[...] = jnp.sum(jnp.where(r == cc, 0.0, sq), keepdims=True)
    return kernel


def rff_cov_loss(inputs, rff_w_scalar, rff_b_row, *, row_tile=1024):
    # TODO(synk): on v7x (2 TensorCores) a single "arbitrary" reduction axis pins this
    # kernel to one core; for large N split rows across cores with per-core partial
    # gram/sum scratch and a tiny combine step.
    n, d = inputs.shape
    rt = int(min(_round_up(row_tile, 8), _round_up(max(n, 1), 8)))
    n_pad = _round_up(max(n, 1), rt)
    n_eff = max(n, 1)
    mask_rows = (n_pad != n)

    x = jnp.pad(inputs.astype(jnp.float32), ((0, n_pad - n), (0, 0)))
    b_row = jnp.asarray(rff_b_row, jnp.float32).reshape(1, d)

    vmem_est = 4 * rt * d * 4 + 2 * d * 4 + d * d * 4 + d * 4 + 64

    out = pl.pallas_call(
        _make_rff_cov_kernel(float(rff_w_scalar), n_eff, rt, mask_rows),
        out_shape=jax.ShapeDtypeStruct((1, 1), jnp.float32),
        grid=(n_pad // rt,),
        in_specs=[pl.BlockSpec((rt, d), lambda i: (i, 0)),
                  pl.BlockSpec((1, d), lambda i: (0, 0))],
        out_specs=pl.BlockSpec((1, 1), lambda i: (0, 0)),
        scratch_shapes=[pltpu.VMEM((d, d), jnp.float32),   # gram accumulator
                        pltpu.VMEM((1, d), jnp.float32)],  # row-sum accumulator
        compiler_params=pltpu.CompilerParams(
            dimension_semantics=("arbitrary",),      # streams into shared scratch
            vmem_limit_bytes=_vmem_limit_bytes(vmem_est)),
        cost_estimate=pl.CostEstimate(
            flops=int(2 * n_pad * d * d + 12 * n_pad * d + 4 * d * d),
            transcendentals=int(n_pad * d),
            bytes_accessed=int(n_pad * d * 4 + d * 4 + 4)),
    )(x, b_row)
    return out[0, 0]


# ----------------------------------------------------------------------------
# OIMLoss module (forward only)
# ----------------------------------------------------------------------------
class OIMLossPallas:
    def __init__(self, num_features, num_pids, num_cq_size, oim_momentum, oim_scalar,
                 key, *, ce_row_tile=256, ce_class_tile=None, rff_row_tile=1024):
        self.num_features = num_features
        self.num_pids = num_pids
        self.num_unlabeled = num_cq_size
        self.momentum = oim_momentum
        self.oim_scalar = oim_scalar
        self.ce_row_tile = ce_row_tile
        self.ce_class_tile = ce_class_tile
        self.rff_row_tile = rff_row_tile

        k1, k2, k3, k4 = jax.random.split(key, 4)
        # Buffers: PyTorch inits lut/cq to zeros; deterministic random unit-norm rows
        # here so the projection matmul is actually exercised.
        lut = jax.random.normal(k1, (num_pids, num_features), jnp.float32)
        self.lut = lut / jnp.linalg.norm(lut, axis=1, keepdims=True)
        cq = jax.random.normal(k2, (num_cq_size, num_features), jnp.float32)
        self.cq = cq / jnp.linalg.norm(cq, axis=1, keepdims=True)
        self.id_relevant_dims = jnp.ones((num_features,), dtype=bool)
        self.first_pos_sample = jnp.zeros((num_pids, num_features), jnp.float32)
        self.second_pos_sample = jnp.zeros((num_pids, num_features), jnp.float32)
        # set externally in the original code; deterministic synthetic values here
        self.middle_of_frame_idx = jnp.arange(num_pids, dtype=jnp.int32) % 10
        self._middle_np = np.asarray(self.middle_of_frame_idx)
        self.header_cq = 0
        # random_fourier_features draws fresh w/b each call in the reference;
        # made deterministic here (num_f=1, c=1, sigma=1).
        self.rff_w = jax.random.normal(k3, (1, 1), jnp.float32)
        self.rff_b = 2.0 * np.pi * jax.random.uniform(k4, (num_features, 1), jnp.float32)
        # hoisted: avoids a device->host sync + reshape per forward call
        self.rff_w_scalar = float(self.rff_w[0, 0])
        self.rff_b_row = np.asarray(self.rff_b[:, 0], np.float32).reshape(1, num_features)

    def forward(self, inputs, roi_label, frame_idxes):
        targets = jnp.concatenate(roi_label)
        label = jnp.asarray(targets, jnp.int32) - 1

        # belong_to_first_half (only feeds the triplet branch / backward updates)
        label_np = np.asarray(label)
        belong_to_first_half = []
        for idx, l in enumerate(label_np):
            frame_idx = frame_idxes[idx // 128]
            if 0 <= l < self.num_pids:
                belong_to_first_half.append(bool(frame_idx <= int(self._middle_np[l])))
            else:
                belong_to_first_half.append(False)

        inds = label_np >= 0                 # dynamic-shape filter done eagerly (glue)
        label = label[inds]
        inputs = inputs[inds]

        # TODO(synk): TripletLossFilter is not defined in the reference source;
        # the triplet branch (prototype_feat / tmp_feat) is not computed.
        loss_triplet = jnp.float32(0.0)

        # loss_cov: RFF + covariance penalty (streamed Pallas kernel).
        loss_cov = rff_cov_loss(inputs, self.rff_w_scalar, self.rff_b_row,
                                row_tile=self.rff_row_tile)

        # loss_oim: non_id_feat = inputs[(label < 0) & (label == 20000)] is always
        # empty, so the unlabeled bank is exactly cq.
        weights = jnp.concatenate([self.lut, self.cq], axis=0)
        loss_oim = oim_cross_entropy(inputs, weights, label, self.oim_scalar,
                                     row_tile=self.ce_row_tile,
                                     class_tile=self.ce_class_tile)

        # circular-queue header bookkeeping (the cq writes themselves happen in the
        # OIM autograd backward, which is out of scope for this forward-only port).
        self.header_cq = (self.header_cq +
                          int(np.sum(np.asarray(label) >= self.num_pids))) % self.num_unlabeled
        return loss_oim, loss_cov, loss_triplet


# ----------------------------------------------------------------------------
# Pure-JAX reference for validation (mirrors the bf16 MXU inputs of the CE kernel)
# ----------------------------------------------------------------------------
def _ref_losses(x, label, weights, oim_scalar, rff_w, rff_b):
    x = x.astype(jnp.float32)
    n, d = x.shape
    mid = x * rff_w[0, 0] + rff_b[:, 0][None, :]
    mid = mid - jnp.min(mid, axis=1, keepdims=True)
    mid = mid / jnp.maximum(jnp.max(mid, axis=1, keepdims=True), 1e-12)
    mid = mid * (np.pi / 2.0)
    z = jnp.sqrt(2.0) * (jnp.cos(mid) + jnp.sin(mid))
    e = jnp.mean(z, axis=0)
    covm = z.T @ z / n - jnp.outer(e, e)
    sq = covm * covm
    loss_cov = jnp.sum(sq) - jnp.trace(sq)

    # mirror the kernel numerics: bf16 x, scale folded into bf16 weights, f32 acc
    xb = x.astype(jnp.bfloat16)
    wb = (weights * oim_scalar).astype(jnp.bfloat16)
    logits = jnp.dot(xb, wb.T, preferred_element_type=jnp.float32)
    lse = jax.scipy.special.logsumexp(logits, axis=1)
    valid = (label != IGNORE_INDEX).astype(jnp.float32)
    safe_lbl = jnp.clip(label, 0, logits.shape[1] - 1)
    tgt = jnp.take_along_axis(logits, safe_lbl[:, None], axis=1)[:, 0]
    loss_oim = jnp.sum((lse - tgt) * valid) / jnp.maximum(jnp.sum(valid), 1.0)
    return loss_oim, loss_cov


if __name__ == "__main__":
    key = jax.random.PRNGKey(0)
    kx, kmod = jax.random.split(key, 2)

    # Small config: D lane-aligned to 128, C = 180 (not a multiple of 128 -> exercises
    # the padded-class bias path).  With the auto class tile the whole W^T is a single
    # VMEM-resident block.
    num_features, num_pids, num_cq = 128, 150, 30
    oim_momentum, oim_scalar = 0.5, 30.0
    module = OIMLossPallas(num_features, num_pids, num_cq, oim_momentum, oim_scalar, kmod)

    # Two "frames" of 8 RoIs each. targets: 0 = background (filtered out),
    # 1..num_pids = labeled ids, 20001 = unlabeled person (-> ignore_index 20000).
    roi_label = [jnp.array([1, 2, 0, 130, 20001, 4, 5, 0], jnp.int32),
                 jnp.array([6, 150, 8, 0, 20001, 145, 2, 3], jnp.int32)]
    frame_idxes = [3, 7]
    total_rois = sum(int(r.shape[0]) for r in roi_label)

    x = jax.random.normal(kx, (total_rois, num_features), jnp.float32)
    x = x / jnp.linalg.norm(x, axis=1, keepdims=True)

    loss_oim, loss_cov, loss_tri = module.forward(x, roi_label, frame_idxes)
    jax.block_until_ready((loss_oim, loss_cov, loss_tri))

    # validate against a pure-JAX reference
    label = jnp.concatenate(roi_label).astype(jnp.int32) - 1
    keep = np.asarray(label) >= 0
    label_f = label[keep]
    x_f = x[keep]
    weights = jnp.concatenate([module.lut, module.cq], axis=0)
    ref_oim, ref_cov = _ref_losses(x_f, label_f, weights, oim_scalar,
                                   module.rff_w, module.rff_b)
    np.testing.assert_allclose(float(loss_oim), float(ref_oim), rtol=2e-3, atol=2e-3)
    np.testing.assert_allclose(float(loss_cov), float(ref_cov), rtol=2e-3, atol=2e-3)

    # also exercise the multi-class-tile online-softmax path and the multi-row-tile
    # padded-row RFF path with explicitly small tiles
    loss_oim_small = oim_cross_entropy(x_f, weights, label_f, oim_scalar,
                                       row_tile=8, class_tile=128)
    loss_cov_small = rff_cov_loss(x_f, module.rff_w_scalar, module.rff_b_row,
                                  row_tile=8)
    jax.block_until_ready((loss_oim_small, loss_cov_small))
    np.testing.assert_allclose(float(loss_oim_small), float(ref_oim), rtol=2e-3, atol=2e-3)
    np.testing.assert_allclose(float(loss_cov_small), float(ref_cov), rtol=2e-3, atol=2e-3)

    print("KERNEL_OK")
</pallas_src>

<mosaic_0001>
module attributes {stable_mosaic.version = 11 : i64} {
  func.func @kernel(%arg0: i32, %arg1: memref<16x128xf32, #tpu.memory_space<vmem>>, %arg2: memref<1x128xf32, #tpu.memory_space<vmem>>, %arg3: memref<1x1xf32, #tpu.memory_space<vmem>>, %arg4: memref<128x128xf32, #tpu.memory_space<vmem>>, %arg5: memref<1x128xf32, #tpu.memory_space<vmem>>) attributes {dimension_semantics = [#tpu.dimension_semantics<arbitrary>], iteration_bounds = array<i64: 1>, scalar_prefetch = 0 : i64, scratch_operands = 2 : i64, tpu.core_type = #tpu.core_type<tc>, window_params = [{transform_indices = @transform_0, window_bounds = array<i64: 16, 128>}, {pipeline_mode = #tpu.pipeline_mode<synchronous>, transform_indices = @transform_1, window_bounds = array<i64: 1, 128>}, {pipeline_mode = #tpu.pipeline_mode<synchronous>, transform_indices = @transform_2, window_bounds = array<i64: 1, 1>}]} {
    %c0_i32 = arith.constant 0 : i32
    %0 = arith.cmpi eq, %arg0, %c0_i32 : i32
    %1 = arith.extui %0 : i1 to i32
    %c0_i32_0 = arith.constant 0 : i32
    %2 = arith.cmpi ne, %1, %c0_i32_0 : i32
    scf.if %2 {
      %cst_23 = arith.constant 0.000000e+00 : f32
      %48 = vector.broadcast %cst_23 : f32 to vector<128x128xf32>
      %c0_24 = arith.constant 0 : index
      %c0_25 = arith.constant 0 : index
      %49 = vector.load %arg4[%c0_24, %c0_25] : memref<128x128xf32, #tpu.memory_space<vmem>>, vector<128x128xf32>
      tpu.vector_store %arg4[%c0_24, %c0_25], %48 {strides = array<i32>} : memref<128x128xf32, #tpu.memory_space<vmem>>, vector<128x128xf32>,
      %cst_26 = arith.constant 0.000000e+00 : f32
      %50 = vector.broadcast %cst_26 : f32 to vector<1x128xf32>
      %c0_27 = arith.constant 0 : index
      %c0_28 = arith.constant 0 : index
      %51 = vector.load %arg5[%c0_27, %c0_28] : memref<1x128xf32, #tpu.memory_space<vmem>>, vector<1x128xf32>
      tpu.vector_store %arg5[%c0_27, %c0_28], %50 {strides = array<i32>} : memref<1x128xf32, #tpu.memory_space<vmem>>, vector<1x128xf32>,
    } else {
    }
    %c0 = arith.constant 0 : index
    %c0_1 = arith.constant 0 : index
    %3 = vector.load %arg1[%c0, %c0_1] : memref<16x128xf32, #tpu.memory_space<vmem>>, vector<16x128xf32>
    %c0_2 = arith.constant 0 : index
    %c0_3 = arith.constant 0 : index
    %4 = vector.load %arg2[%c0_2, %c0_3] : memref<1x128xf32, #tpu.memory_space<vmem>>, vector<1x128xf32>
    %cst = arith.constant 0.67965436 : f32
    %5 = vector.broadcast %cst : f32 to vector<16x128xf32>
    %6 = arith.mulf %3, %5 : vector<16x128xf32>
    %7 = vector.broadcast %4 : vector<1x128xf32> to vector<16x128xf32>
    %8 = arith.addf %6, %7 : vector<16x128xf32>
    %cst_4 = arith.constant dense<0x7F800000> : vector<16xf32>
    %9 = vector.multi_reduction <minimumf>, %8, %cst_4 [1] : vector<16x128xf32> to vector<16xf32>
    %10 = vector.shape_cast %9 : vector<16xf32> to vector<16x1xf32>
    %11 = vector.broadcast %10 : vector<16x1xf32> to vector<16x128xf32>
    %12 = arith.subf %8, %11 : vector<16x128xf32>
    %cst_5 = arith.constant dense<0xFF800000> : vector<16xf32>
    %13 = vector.multi_reduction <maximumf>, %12, %cst_5 [1] : vector<16x128xf32> to vector<16xf32>
    %14 = vector.shape_cast %13 : vector<16xf32> to vector<16x1xf32>
    %cst_6 = arith.constant 9.99999996E-13 : f32
    %15 = vector.broadcast %cst_6 : f32 to vector<16x1xf32>
    %16 = arith.maximumf %14, %15 : vector<16x1xf32>
    %17 = vector.broadcast %16 : vector<16x1xf32> to vector<16x128xf32>
    %18 = arith.divf %12, %17 : vector<16x128xf32>
    %cst_7 = arith.constant 1.57079637 : f32
    %19 = vector.broadcast %cst_7 : f32 to vector<16x128xf32>
    %20 = arith.mulf %18, %19 : vector<16x128xf32>
    %cst_8 = arith.constant 0.785398185 : f32
    %21 = vector.broadcast %cst_8 : f32 to vector<16x128xf32>
    %22 = arith.subf %20, %21 : vector<16x128xf32>
    %23 = math.cos %22 : vector<16x128xf32>
    %cst_9 = arith.constant 2.000000e+00 : f32
    %24 = vector.broadcast %cst_9 : f32 to vector<16x128xf32>
    %25 = arith.mulf %24, %23 : vector<16x128xf32>
    %c16_i32 = arith.constant 16 : i32
    %26 = arith.muli %arg0, %c16_i32 : i32
    %27 = tpu.iota {dimensions = array<i32: 0>} : vector<16x1xi32>
    %28 = vector.broadcast %26 : i32 to vector<16x1xi32>
    %29 = arith.addi %28, %27 : vector<16x1xi32>
    %c13_i32 = arith.constant 13 : i32
    %30 = vector.broadcast %c13_i32 : i32 to vector<16x1xi32>
    %31 = arith.cmpi slt, %29, %30 : vector<16x1xi32>
    %cst_10 = arith.constant 0.000000e+00 : f32
    %32 = vector.shape_cast %31 : vector<16x1xi1> to vector<16x1xi1>
    %33 = vector.broadcast %32 : vector<16x1xi1> to vector<16x128xi1>
    %34 = vector.broadcast %cst_10 : f32 to vector<16x128xf32>
    %35 = arith.select %33, %25, %34 : vector<16x128xi1>, vector<16x128xf32>
    %c0_11 = arith.constant 0 : index
    %c0_12 = arith.constant 0 : index
    %36 = vector.load %arg4[%c0_11, %c0_12] : memref<128x128xf32, #tpu.memory_space<vmem>>, vector<128x128xf32>
    %cst_13 = arith.constant dense<0.000000e+00> : vector<128x128xf32>
    %37 = tpu.matmul %35, %35, %cst_13 {dimension_numbers = #tpu.dot_dimension_numbers<[0], [0], [1], [1], [0, 1, 1, 1], [], []>} : vector<16x128xf32>, vector<16x128xf32>, vector<128x128xf32> -> vector<128x128xf32>
    %38 = arith.addf %36, %37 : vector<128x128xf32>
    %c0_14 = arith.constant 0 : index
    %c0_15 = arith.constant 0 : index
    %39 = vector.load %arg4[%c0_14, %c0_15] : memref<128x128xf32, #tpu.memory_space<vmem>>, vector<128x128xf32>
    tpu.vector_store %arg4[%c0_14, %c0_15], %38 {strides = array<i32>} : memref<128x128xf32, #tpu.memory_space<vmem>>, vector<128x128xf32>,
    %c0_16 = arith.constant 0 : index
    %c0_17 = arith.constant 0 : index
    %40 = vector.load %arg5[%c0_16, %c0_17] : memref<1x128xf32, #tpu.memory_space<vmem>>, vector<1x128xf32>
    %cst_18 = arith.constant dense<0.000000e+00> : vector<128xf32>
    %41 = vector.multi_reduction <add>, %35, %cst_18 [0] : vector<16x128xf32> to vector<128xf32>
    %42 = vector.shape_cast %41 : vector<128xf32> to vector<1x128xf32>
    %43 = arith.addf %40, %42 : vector<1x128xf32>
    %c0_19 = arith.constant 0 : index
    %c0_20 = arith.constant 0 : index
    %44 = vector.load %arg5[%c0_19, %c0_20] : memref<1x128xf32, #tpu.memory_space<vmem>>, vector<1x128xf32>
    tpu.vector_store %arg5[%c0_19, %c0_20], %43 {strides = array<i32>} : memref<1x128xf32, #tpu.memory_space<vmem>>, vector<1x128xf32>,
    %c0_i32_21 = arith.constant 0 : i32
    %45 = arith.cmpi eq, %arg0, %c0_i32_21 : i32
    %46 = arith.extui %45 : i1 to i32
    %c0_i32_22 = arith.constant 0 : i32
    %47 = arith.cmpi ne, %46, %c0_i32_22 : i32
    scf.if %47 {
      %c0_23 = arith.constant 0 : index
      %c0_24 = arith.constant 0 : index
      %48 = vector.load %arg5[%c0_23, %c0_24] : memref<1x128xf32, #tpu.memory_space<vmem>>, vector<1x128xf32>
      %c0_25 = arith.constant 0 : index
      %c0_26 = arith.constant 0 : index
      %49 = vector.load %arg4[%c0_25, %c0_26] : memref<128x128xf32, #tpu.memory_space<vmem>>, vector<128x128xf32>
      %cst_27 = arith.constant 0.0769230798 : f32
      %50 = vector.broadcast %cst_27 : f32 to vector<128x128xf32>
      %51 = arith.mulf %49, %50 : vector<128x128xf32>
      %cst_28 = arith.constant dense<0.000000e+00> : vector<128x128xf32>
      %52 = tpu.matmul %48, %48, %cst_28 {dimension_numbers = #tpu.dot_dimension_numbers<[0], [0], [1], [1], [0, 1, 1, 1], [], []>} : vector<1x128xf32>, vector<1x128xf32>, vector<128x128xf32> -> vector<128x128xf32>
      %cst_29 = arith.constant 5.917160e-03 : f32
      %53 = vector.broadcast %cst_29 : f32 to vector<128x128xf32>
      %54 = arith.mulf %52, %53 : vector<128x128xf32>
      %55 = arith.subf %51, %54 : vector<128x128xf32>
      %56 = arith.mulf %55, %55 : vector<128x128xf32>
      %57 = tpu.iota {dimensions = array<i32: 0>} : vector<128x128xi32>
      %58 = tpu.iota {dimensions = array<i32: 1>} : vector<128x128xi32>
      %59 = arith.cmpi eq, %57, %58 : vector<128x128xi32>
      %cst_30 = arith.constant 0.000000e+00 : f32
      %60 = vector.broadcast %cst_30 : f32 to vector<128x128xf32>
      %61 = arith.select %59, %60, %56 : vector<128x128xi1>, vector<128x128xf32>
      %62 = vector.shape_cast %61 : vector<128x128xf32> to vector<1x128x128xf32>
      %cst_31 = arith.constant dense<0.000000e+00> : vector<1xf32>
      %63 = vector.multi_reduction <add>, %62, %cst_31 [1, 2] : vector<1x128x128xf32> to vector<1xf32>
      %64 = vector.shape_cast %63 : vector<1xf32> to vector<1x1x1xf32>
      %65 = vector.extract %64[0, 0, 0] : f32 from vector<1x1x1xf32>
      %66 = vector.broadcast %65 : f32 to vector<1x1xf32>
      %c0_32 = arith.constant 0 : index
      %c0_33 = arith.constant 0 : index
      %67 = vector.load %arg3[%c0_32, %c0_33] : memref<1x1xf32, #tpu.memory_space<vmem>>, vector<1x1xf32>
      tpu.vector_store %arg3[%c0_32, %c0_33], %66 {strides = array<i32>} : memref<1x1xf32, #tpu.memory_space<vmem>>, vector<1x1xf32>,
    } else {
    }
    return
  }
  func.func @transform_0(%arg0: i32) -> (i32, i32) {
    %c0_i32 = arith.constant 0 : i32
    %c0_i32_0 = arith.constant 0 : i32
    return %arg0, %c0_i32 : i32, i32
  }
  func.func @transform_1(%arg0: i32) -> (i32, i32) {
    %c0_i32 = arith.constant 0 : i32
    %c0_i32_0 = arith.constant 0 : i32
    %c0_i32_1 = arith.constant 0 : i32
    return %c0_i32, %c0_i32_0 : i32, i32
  }
  func.func @transform_2(%arg0: i32) -> (i32, i32) {
    %c0_i32 = arith.constant 0 : i32
    %c0_i32_0 = arith.constant 0 : i32
    %c0_i32_1 = arith.constant 0 : i32
    return %c0_i32, %c0_i32_0 : i32, i32
  }
}

</mosaic_0001>

<bundles_post_ra>
// kernel: tpu_custom_call.1
= control target key start
LH: loop header
LB: loop body
LE: loop exit
PB: predicated region body
PF: predicated region fallthrough
CT: control target
= control target key end

     0   :  { %7 = vsyncpa [#allocation5], 0  ;;  %s1452_s0 = inlined_call_operand.hbm [shape: f32[16,128], index: 0, kind: input, shape index: {}]   ;;  %s1453_s1 = inlined_call_operand.vmem [shape: f32[1,128], index: 1, kind: input, shape index: {}]   ;;  %s1454_s2 = inlined_call_operand.hbm [shape: f32[1,1], index: 2, kind: output, shape index: {}]  }
   0x1   :  { %8 = vsyncpa [#allocation6], 0  ;;  %s1213_s9 = smov [#allocation4]   ;;  %s1165_s13 = scalar_lea.hbm %s1452_s0, 256 }
   0x2   :  { %s14_s10 = sshll.u32 %s1213_s9, 4  ;;  %p1166_p0 = scmp.ne.s32.totalorder %s1452_s0, %s1165_s13  ;;  %s15_s10 = int_to_ptr.vmem [resolvable:$true] %s14_s10 }
   0x3   :  { %p1169_p1 = scmp.lt.u32.totalorder %s1165_s13, %s1452_s0 }
   0x5   :  { %p1171_p2 = pnand %p1169_p1, %p1166_p0 }
   0x7   :  { %1174 = shalt.err (!%p1171_p2)
}
   0x8   :  { %s1175_s18 = scalar_lea.vmem %s15_s10, 256  ;;  %p1180_p4 = scmp.lt.s32.totalorder %s15_s10, %s15_s10 }
   0x9   :  { %p1176_p3 = scmp.ne.s32.totalorder %s15_s10, %s1175_s18  ;;  %p1181_p5 = scmp.lt.s32.totalorder %s1175_s18, %s1175_s18 }
   0xb   :  { %p1182_p6 = por %p1181_p5, %p1180_p4 }
   0xd   :  { %p1183_p7 = pnand %p1182_p6, %p1176_p3 }
   0xf   :  { %1186 = shalt.err (!%p1183_p7)
}
  0x10   :  { %s1214_s19 = smov 128   ;;  %s1215_s20 = smov 8  }
  0x11   :  { %20 = dma.hbm_to_vmem [thread:$0]  %s1452_s0, 256, %s15_s10, [#allocation5], %s1214_s19, %s1214_s19, %s1215_s20  }
  0x12   :  { %1209 = dma.done.wait [#allocation5], 256  }
  0x13   :  { %1210 = vsyncadd [#allocation5], 4294967040  ;;  %v48_v0 = vld [vmem:[#allocation4 + $0x8] sm:$0xff]  ;;  %v991_v1 = vld [vmem:[%s1453_s1] ss:$0 sm:$0xff]  ;;  %v289_v11 = vlaneseq  ;;  %v1216_v15 = vmov 0.0  }
  0x14   :  { %v47_v2 = vld [vmem:[#allocation4] sm:$0xff]  ;;  %v51_v3 = vmul.f32 0.67965436, %v48_v0  ;;  %46 = vst [vmem:[#allocation3] sm:$0x1] %v1216_v15  ;;  %s1224_s0 = smov [#allocation7]  }
  0x15   :  { %v50_v4 = vmul.f32 0.67965436, %v47_v2  ;;  %v1255_v12 = vshrl.u32 %v289_v11, 7  ;;  %v1260_v14 = vand.u32 127, %v289_v11  ;;  %v1217_v48 = vmov 683565275  }
  0x16   :  { %v59_v5 = vadd.f32 %v991_v1, %v51_v3  ;;  %v1218_v50 = vmov 2475754826   ;;  %v1219_v54 = vmov 2131351028   ;;  %v1220_v56 = vmov 2102212464  }
  0x17   :  { %v58_v6 = vadd.f32 %v991_v1, %v50_v4  ;;  %v1258_v13 = vadd.s32 8, %v1255_v12  ;;  %v1221_v61 = vmov 920167782   ;;  %v1222_v2 = vmov 1326507024   ;;  %s982_s1 = sshll.u32 %s1224_s0, 4  ;;  %s983_s1 = int_to_ptr.vmem [resolvable:$true] %s982_s1 }
  0x18   :  { %62 = vmin.xlane.f32.xlu0 %v59_v5  ;;  %s1187_s26 = scalar_lea.vmem %s983_s1, 16  ;;  %s1191_s27 = scalar_lea.vmem %s983_s1, 32 }
  0x19   :  { %vm918_vm0 = vcmp.eq.s32.totalorder %v1258_v13, %v1260_v14  ;;  %p1188_p8 = scmp.ne.s32.totalorder %s983_s1, %s1187_s26  ;;  %p1192_p9 = scmp.lt.s32.totalorder %s983_s1, %s983_s1 }
  0x1a   :  { %p1193_p10 = scmp.lt.s32.totalorder %s1191_s27, %s1187_s26 }
  0x1c   :  { %60 = vmin.xlane.f32.xlu0 %v58_v6  ;;  %p1194_p11 = por %p1193_p10, %p1192_p9 }
  0x1e   :  { %p1195_p12 = pnand %p1194_p11, %p1188_p8 }
  0xa5   :  { %v63_v7 = vpop.xlane.xlu0 %62 }
  0xa6   :  { %v65_v8 = vsub.f32 %v59_v5, %v63_v7 }
  0xa8   :  { %68 = vmax.xlane.f32.xlu1 %v65_v8 }
  0xa9   :  { %v61_v9 = vpop.xlane.xlu0 %60 }
  0xaa   :  { %v64_v10 = vsub.f32 %v58_v6, %v61_v9 }
  0xac   :  { %66 = vmax.xlane.f32.xlu1 %v64_v10 }
 0x135   :  { %v69_v16 = vpop.xlane.xlu1 %68 }
 0x136   :  { %v71_v17 = vmax.f32 %v69_v16, 1e-12 }
 0x138   :  { %1153 = vrcp.f32 %v71_v17 }
 0x139   :  { %v67_v18 = vpop.xlane.xlu1 %66 }
 0x13a   :  { %v70_v19 = vmax.f32 %v67_v18, 1e-12 }
 0x13c   :  { %1155 = vrcp.f32 %v70_v19 }
 0x142   :  { %v1154_v20 = vpop.eup %1153 }
 0x143   :  { %v75_v21 = vmul.f32 %v1154_v20, %v65_v8 }
 0x145   :  { %v77_v22 = vmul.f32 1.5707964, %v75_v21 }
 0x146   :  { %v1156_v23 = vpop.eup %1155 }
 0x147   :  { %v1264_v24 = vadd.f32 -0.7853982, %v77_v22  ;;  %v73_v25 = vmul.f32 %v1156_v23, %v64_v10 }
 0x149   :  { %v186_v26 = vand.u32 2139095040, %v1264_v24  ;;  %v76_v27 = vmul.f32 1.5707964, %v73_v25  ;;  %v183_v33 = vand.u32 2147483647, %v1264_v24 }
 0x14b   :  { %v187_v28 = vshrl.u32 %v186_v26, 23  ;;  %v1267_v29 = vadd.f32 -0.7853982, %v76_v27  ;;  %v1276_v38 = vand.u32 8388607, %v183_v33 }
 0x14d   :  { %v998_v30 = vadd.s32 4294967169, %v187_v28  ;;  %v83_v31 = vand.u32 2139095040, %v1267_v29  ;;  %v80_v32 = vand.u32 2147483647, %v1267_v29  ;;  %v191_v44 = vor.u32 8388608, %v1276_v38 }
 0x14e   :  { %vm82_vm15 = vcmp.lt.s32.totalorder %v1267_v29, 0 }
 0x14f   :  { %v193_v34 = vadd.s32 1, %v998_v30  ;;  %v84_v35 = vshrl.u32 %v83_v31, 23  ;;  %v87_v36 = vand.u32 8388607, %v80_v32 }
 0x151   :  { %vm194_vm1 = vcmp.gt.s32.totalorder %v193_v34, 0  ;;  %v994_v37 = vadd.s32 4294967169, %v84_v35  ;;  %v88_v40 = vor.u32 8388608, %v87_v36 }
 0x152   :  { %v195_v39 = vsel %vm194_vm1, %v193_v34, 0  ;;  %vm1339_vm1 = vcmp.le.f32.partialorder %v80_v32, 0.7853982 }
 0x153   :  { %v197_v41 = vand.u32 31, %v195_v39  ;;  %v90_v42 = vadd.s32 1, %v994_v37  ;;  %v1278_v43 = vshrl.u32 %v195_v39, 5  ;;  %v1283_v47 = vshll.u32 %v88_v40, 8 }
 0x155   :  { %vm91_vm2 = vcmp.gt.s32.totalorder %v90_v42, 0  ;;  %v1281_v45 = vsub.s32 32, %v197_v41  ;;  %v200_v49 = vshll.u32 %v1217_v48, %v197_v41  ;;  %v203_v51 = vshll.u32 %v1218_v50, %v197_v41 }
 0x156   :  { %v92_v46 = vsel %vm91_vm2, %v90_v42, 0  ;;  %v206_v55 = vshll.u32 %v1219_v54, %v197_v41  ;;  %v209_v57 = vshll.u32 %v1220_v56, %v197_v41  ;;  %v212_v62 = vshll.u32 %v1221_v61, %v197_v41 }
 0x157   :  { %v93_v52 = vshrl.u32 %v92_v46, 5  ;;  %v94_v53 = vand.u32 31, %v92_v46  ;;  %v201_v58 = vshrl.u32 %v1218_v50, %v1281_v45  ;;  %v204_v59 = vshrl.u32 %v1219_v54, %v1281_v45 }
 0x158   :  { %v207_v60 = vshrl.u32 %v1220_v56, %v1281_v45  ;;  %v210_v1 = vshrl.u32 %v1221_v61, %v1281_v45  ;;  %v213_v3 = vshrl.u32 %v1222_v2, %v1281_v45  ;;  %vm215_vm7 = vcmp.lt.s32.totalorder %v1278_v43, 1 }
 0x159   :  { %v95_v63 = vsub.s32 32, %v94_v53  ;;  %v97_v0 = vshll.u32 %v1217_v48, %v94_v53  ;;  %v100_v4 = vshll.u32 %v1218_v50, %v94_v53  ;;  %v103_v5 = vshll.u32 %v1219_v54, %v94_v53 }
 0x15a   :  { %v106_v6 = vshll.u32 %v1220_v56, %v94_v53  ;;  %v109_v7 = vshll.u32 %v1221_v61, %v94_v53  ;;  %vm112_vm3 = vcmp.lt.s32.totalorder %v93_v52, 1  ;;  %vm113_vm4 = vcmp.lt.s32.totalorder %v93_v52, 2 }
 0x15b   :  { %v98_v8 = vshrl.u32 %v1218_v50, %v95_v63  ;;  %v101_v9 = vshrl.u32 %v1219_v54, %v95_v63  ;;  %v104_v10 = vshrl.u32 %v1220_v56, %v95_v63  ;;  %v96_v11 = vshrl.u32 %v1217_v48, %v95_v63 }
 0x15c   :  { %v107_v15 = vshrl.u32 %v1221_v61, %v95_v63  ;;  %v110_v16 = vshrl.u32 %v1222_v2, %v95_v63  ;;  %vm114_vm5 = vcmp.lt.s32.totalorder %v93_v52, 3  ;;  %vm115_vm6 = vcmp.lt.s32.totalorder %v93_v52, 4 }
 0x15d   :  { %v99_v17 = vor.u32 %v98_v8, %v97_v0  ;;  %v102_v18 = vor.u32 %v101_v9, %v100_v4  ;;  %v105_v19 = vor.u32 %v104_v10, %v103_v5  ;;  %v202_v22 = vor.u32 %v201_v58, %v200_v49 }
 0x15e   :  { %v108_v20 = vor.u32 %v107_v15, %v106_v6  ;;  %v111_v21 = vor.u32 %v110_v16, %v109_v7  ;;  %v205_v27 = vor.u32 %v204_v59, %v203_v51  ;;  %v208_v34 = vor.u32 %v207_v60, %v206_v55 }
 0x15f   :  { %v117_v23 = vsel %vm115_vm6, %v105_v19, 2102212464  ;;  %v120_v25 = vsel %vm112_vm3, %v99_v17, %v102_v18  ;;  %v124_v26 = vsel %vm112_vm3, %v102_v18, %v105_v19  ;;  %v116_v28 = vsel %vm112_vm3, %v96_v11, %v99_v17 }
 0x160   :  { %v121_v30 = vsel %vm115_vm6, %v108_v20, 920167782  ;;  %v125_v31 = vsel %vm115_vm6, %v111_v21, 1326507024  ;;  %v118_v35 = vsel %vm114_vm5, %v102_v18, %v117_v23  ;;  %v211_v39 = vor.u32 %v210_v1, %v209_v57 }
 0x161   :  { %v122_v36 = vsel %vm114_vm5, %v105_v19, %v121_v30  ;;  %v126_v37 = vsel %vm114_vm5, %v108_v20, %v125_v31  ;;  %v214_v42 = vor.u32 %v213_v3, %v212_v62  ;;  %v119_v53 = vsel %vm113_vm4, %v116_v28, %v118_v35 }
 0x162   :  { %v123_v40 = vsel %vm113_vm4, %v120_v25, %v122_v36  ;;  %v127_v41 = vsel %vm113_vm4, %v124_v26, %v126_v37  ;;  %vm218_vm8 = vcmp.lt.s32.totalorder %v1278_v43, 4  ;;  %v231_v54 = vshll.u32 %v191_v44, 8 }
 0x163   :  { %v1299_v46 = vmul.u32.u64.low %v1283_v47, %v127_v41  ;;  %v1300_v49 = vmul.u32.u64.high %v1283_v47, %v127_v41, %v1299_v46  ;;  %v1303_v50 = vmul.u32.u64.low %v1283_v47, %v123_v40  ;;  %v1304_v51 = vmul.u32.u64.high %v1283_v47, %v123_v40, %v1303_v50 }
 0x164   :  { %vm217_vm9 = vcmp.lt.s32.totalorder %v1278_v43, 3  ;;  %v220_v55 = vsel %vm218_vm8, %v208_v34, 2102212464  ;;  %v223_v56 = vsel %vm215_vm7, %v202_v22, %v205_v27  ;;  %v224_v57 = vsel %vm218_vm8, %v211_v39, 920167782 }
 0x165   :  { %v199_v58 = vshrl.u32 %v1217_v48, %v1281_v45  ;;  %v225_v59 = vsel %vm217_vm9, %v208_v34, %v224_v57  ;;  %v227_v52 = vsel %vm215_vm7, %v205_v27, %v208_v34  ;;  %v228_v60 = vsel %vm218_vm8, %v214_v42, 1326507024 }
 0x166   :  { %v135_v61 = vmul.u32 %v1283_v47, %v119_v53  ;;  %vm137_vm10 = vc.u32 %v1300_v49, %v1303_v50  ;;  %v138_v38 = vadd.s32 1, %v1304_v51  ;;  %vm216_vm11 = vcmp.lt.s32.totalorder %v1278_v43, 2 }
 0x167   :  { %v219_v44 = vsel %vm215_vm7, %v199_v58, %v202_v22  ;;  %v221_v62 = vsel %vm217_vm9, %v205_v27, %v220_v55  ;;  %v226_v63 = vsel %vm216_vm11, %v223_v56, %v225_v59  ;;  %v229_v0 = vsel %vm217_vm9, %v211_v39, %v228_v60 }
 0x168   :  { %v139_v45 = vsel %vm137_vm10, %v138_v38, %v1304_v51  ;;  %v230_v48 = vsel %vm216_vm11, %v227_v52, %v229_v0  ;;  %v1325_v1 = vmul.u32.u64.low %v231_v54, %v226_v63  ;;  %v1326_v2 = vmul.u32.u64.high %v231_v54, %v226_v63, %v1325_v1 }
 0x169   :  { %v140_v3 = vadd.s32 %v139_v45, %v135_v61  ;;  %v1328_v47 = vmul.u32.u64.low %v231_v54, %v230_v48  ;;  %v1329_v4 = vmul.u32.u64.high %v231_v54, %v230_v48, %v1328_v47  ;;  %v222_v5 = vsel %vm216_vm11, %v219_v44, %v221_v62 }
 0x16a   :  { %v241_v7 = vadd.s32 1, %v1326_v2  ;;  %v238_v43 = vmul.u32 %v231_v54, %v222_v5  ;;  %v136_v28 = vadd.s32 %v1303_v50, %v1300_v49  ;;  %vm185_vm2 = vcmp.lt.s32.totalorder %v1264_v24, 0 }
 0x16b   :  { %v141_v6 = vadd.s32 536870912, %v140_v3  ;;  %vm240_vm12 = vc.u32 %v1329_v4, %v1325_v1  ;;  %v239_v51 = vadd.s32 %v1325_v1, %v1329_v4  ;;  %vm1351_vm3 = vcmp.le.f32.partialorder %v183_v33, 0.7853982 }
 0x16c   :  { %v242_v9 = vsel %vm240_vm12, %v241_v7, %v1326_v2  ;;  %vm172_vm7 = vweird.f32 %v1267_v29  ;;  %vm275_vm11 = vweird.f32 %v1264_v24  ;;  %vm296_vm12 = vcmp.lt.s32.totalorder %v1258_v13, 13 }
 0x16d   :  { %v142_v8 = vshrl.u32 %v141_v6, 30  ;;  %v243_v11 = vadd.s32 %v242_v9, %v238_v43 }
 0x16f   :  { %v143_v10 = vshll.u32 %v142_v8, 30  ;;  %v244_v16 = vadd.s32 536870912, %v243_v11  ;;  %v166_v62 = vsub.s32 4, %v142_v8 }
 0x171   :  { %v144_v15 = vsub.s32 %v140_v3, %v143_v10  ;;  %v245_v18 = vshrl.u32 %v244_v16, 30  ;;  %v167_v1 = vsel %vm82_vm15, %v166_v62, %v142_v8 }
 0x172   :  { %v169_v32 = vsel %vm1339_vm1, 0, %v167_v1 }
 0x173   :  { %v146_v17 = vsub.s32 0, %v144_v15  ;;  %v246_v20 = vshll.u32 %v245_v18, 30  ;;  %v269_v4 = vsub.s32 4, %v245_v18  ;;  %v173_v6 = vand.u32 3, %v169_v32 }
 0x175   :  { %v995_v19 = vmin.u32 %v146_v17, %v144_v15  ;;  %v247_v22 = vsub.s32 %v243_v11, %v246_v20  ;;  %v270_v7 = vsel %vm185_vm2, %v269_v4, %v245_v18  ;;  %vm178_vm4 = vcmp.eq.s32.totalorder %v173_v6, 2 }
 0x176   :  { %v272_v33 = vsel %vm1351_vm3, 0, %v270_v7  ;;  %vm175_vm5 = vcmp.eq.s32.totalorder %v173_v6, 0  ;;  %vm174_vm6 = vcmp.lt.s32.totalorder %v173_v6, 2 }
 0x177   :  { %v148_v21 = vclz %v995_v19  ;;  %v249_v25 = vsub.s32 0, %v247_v22  ;;  %v276_v17 = vand.u32 3, %v272_v33 }
 0x179   :  { %v996_v23 = vadd.s32 4294967294, %v148_v21  ;;  %v999_v27 = vmin.u32 %v249_v25, %v247_v22  ;;  %vm281_vm8 = vcmp.eq.s32.totalorder %v276_v17, 2  ;;  %vm278_vm9 = vcmp.eq.s32.totalorder %v276_v17, 0 }
 0x17a   :  { %vm277_vm10 = vcmp.lt.s32.totalorder %v276_v17, 2 }
 0x17b   :  { %vm997_vm13 = vcmp.lt.s32.totalorder %v996_v23, 0  ;;  %v251_v34 = vclz %v999_v27 }
 0x17c   :  { %v151_v26 = vsel %vm997_vm13, 0, %v996_v23  ;;  %vm1223_vm13 = vmmov 1  }
 0x17d   :  { %v152_v30 = vsub.s32 32, %v151_v26  ;;  %v156_v31 = vsub.s32 4294967266, %v151_v26  ;;  %v153_v35 = vshll.u32 %v144_v15, %v151_v26  ;;  %v1000_v39 = vadd.s32 4294967294, %v251_v34 }
 0x17f   :  { %v154_v36 = vshrl.u32 %v136_v28, %v152_v30  ;;  %v157_v37 = vadd.s32 127, %v156_v31  ;;  %vm1001_vm14 = vcmp.lt.s32.totalorder %v1000_v39, 0 }
 0x180   :  { %v254_v46 = vsel %vm1001_vm14, 0, %v1000_v39  ;;  %vm1126_vm14 = vmpackc.low %vm296_vm12, %vm1223_vm13 }
 0x181   :  { %v155_v40 = vor.u32 %v154_v36, %v153_v35  ;;  %v158_v41 = vshll.u32 %v157_v37, 23  ;;  %v255_v53 = vsub.s32 32, %v254_v46  ;;  %v259_v54 = vsub.s32 4294967266, %v254_v46 }
 0x182   :  { %v256_v57 = vshll.u32 %v247_v22, %v254_v46 }
 0x183   :  { %v159_v42 = vor.u32 4788187, %v158_v41  ;;  %v162_v56 = vcvt.s32.f32 %v155_v40  ;;  %v257_v49 = vshrl.u32 %v239_v51, %v255_v53  ;;  %v260_v50 = vadd.s32 127, %v259_v54  ;;  %v577_v41 = vld [vmem:[#allocation3] sm:$0x1] }
 0x185   :  { %v160_v55 = vand.u32 2147483647, %v159_v42  ;;  %v258_v59 = vor.u32 %v257_v49, %v256_v57  ;;  %v261_v52 = vshll.u32 %v260_v50, 23 }
 0x187   :  { %v163_v58 = vmul.f32 %v162_v56, %v160_v55  ;;  %v262_v61 = vor.u32 4788187, %v261_v52  ;;  %v265_v45 = vcvt.s32.f32 %v258_v59 }
 0x189   :  { %v164_v60 = vxor.u32 2147483648, %v163_v58  ;;  %v263_v0 = vand.u32 2147483647, %v262_v61 }
 0x18b   :  { %v165_v44 = vsel %vm82_vm15, %v164_v60, %v163_v58  ;;  %v266_v48 = vmul.f32 %v265_v45, %v263_v0  ;;  %vm704_vm15 = vcmask 1040384  }
 0x18c   :  { %v168_v63 = vsel %vm1339_vm1, %v1267_v29, %v165_v44  ;;  %vm351_vm1 = vcmask 130048  }
 0x18d   :  { %1157 = vcosq.f32 %v168_v63  ;;  %v267_v2 = vxor.u32 2147483648, %v266_v48 }
 0x18e   :  { %1159 = vsinq.f32 %v168_v63 }
 0x18f   :  { %v268_v47 = vsel %vm185_vm2, %v267_v2, %v266_v48  ;;  %vm655_vm2 = vcmask 7168  }
 0x190   :  { %v271_v5 = vsel %vm1351_vm3, %v1264_v24, %v268_v47  ;;  %vm917_vm3 = vcmp.eq.s32.totalorder %v1255_v12, %v1260_v14 }
 0x191   :  { %1161 = vcosq.f32 %v271_v5 }
 0x192   :  { %1163 = vsinq.f32 %v271_v5 }
 0x197   :  { %v1158_v8 = vpop.eup %1157 }
 0x198   :  { %v1160_v43 = vpop.eup %1159  ;;  %v179_v9 = vxor.u32 2147483648, %v1158_v8 }
 0x199   :  { %v176_v10 = vxor.u32 2147483648, %v1160_v43 }
 0x19a   :  { %v180_v11 = vsel %vm178_vm4, %v179_v9, %v1160_v43 }
 0x19b   :  { %v177_v15 = vsel %vm175_vm5, %v1158_v8, %v176_v10  ;;  %v1162_v20 = vpop.eup %1161 }
 0x19c   :  { %v181_v16 = vsel %vm174_vm6, %v177_v15, %v180_v11  ;;  %v1164_v18 = vpop.eup %1163  ;;  %v282_v22 = vxor.u32 2147483648, %v1162_v20 }
 0x19d   :  { %v182_v19 = vsel %vm172_vm7, nan, %v181_v16  ;;  %v279_v23 = vxor.u32 2147483648, %v1164_v18 }
 0x19e   :  { %v286_v21 = vmul.f32 2.0, %v182_v19  ;;  %v283_v25 = vsel %vm281_vm8, %v282_v22, %v1164_v18 }
 0x19f   :  { %v280_v26 = vsel %vm278_vm9, %v1162_v20, %v279_v23 }
 0x1a0   :  { %319 = vxpose.xlu0.b32.start [1/2] (short) %v286_v21, 128  ;;  %v284_v27 = vsel %vm277_vm10, %v280_v26, %v283_v25 }
 0x1a1   :  { %v285_v28 = vsel %vm275_vm11, nan, %v284_v27 }
 0x1a2   :  { %v287_v29 = vmul.f32 2.0, %v285_v28 }
 0x1a4   :  { %v1125_v30 = vpack.c.bf16 %v287_v29, %v286_v21  ;;  %v302_v31 = vsel %vm296_vm12, %v287_v29, 0.0 }
 0x1a5   :  { %320 = vxpose.xlu0.b32.end [2/2] (short) %v302_v31, 128  ;;  %v578_v34 = vadd.f32 %v302_v31, %v286_v21 }
 0x1a6   :  { %1127 = vmatprep.subr.msk.bf16.mxu0 %vm1126_vm14, %v1125_v30 }
 0x1a7   :  { %1130 = vmatpush3.bf16.msk.msra.mxu0 %vm1126_vm14, %v1125_v30  ;;  %v579_v35 = vrot.slane %v578_v34, 4 }
 0x1a9   :  { %v580_v36 = vadd.f32 %v579_v35, %v578_v34 }
 0x1ab   :  { %v581_v37 = vrot.slane %v580_v36, 2 }
 0x1ad   :  { %v582_v39 = vadd.f32 %v581_v37, %v580_v36 }
 0x1af   :  { %v583_v40 = vrot.slane %v582_v39, 1 }
 0x1b1   :  { %v584_v24 = vadd.f32 %v583_v40, %v582_v39 }
 0x1b3   :  { %v585_v42 = vadd.f32 %v584_v24, %v577_v41  ;;  %v902_v41 = vadd.s32 24, %v1255_v12 }
 0x1b5   :  { %586 = vst [vmem:[#allocation3] sm:$0x1] %v585_v42  ;;  %vm920_vm4 = vcmp.eq.s32.totalorder %v902_v41, %v1260_v14 }
 0x1bc   :  { %v590_v46 = vld [vmem:[#allocation3] sm:$0x1] }
 0x1bd   :  { %623 = vxpose.xlu1.b32.start.end [1/1] (short) %v590_v46, 128  ;;  %1099 = vmatprep.subr.msk.mxu1 %vm704_vm15, %v590_v46 }
 0x1be   :  { %1100 = vmatpush3.msk.msra.mxu1 %vm704_vm15, %v590_v46 }
 0x221   :  { %v335_v51 = vpop.trf.xlu0 }
 0x222   :  { %1075 = vmatprep.mubr.msk.f32.mxu0 %vm351_vm1, %v335_v51  ;;  %v901_v51 = vadd.s32 16, %v1255_v12 }
 0x225   :  { %v336_v53 = vpop.trf.xlu0 }
 0x226   :  { %1076 = vmatmul.mubr.msk.f32.vlgmr.msra.gmra.mrb[0].mxu0 %vm351_vm1, %v336_v53 }
 0x229   :  { %v337_v54 = vpop.trf.xlu0 }
 0x22a   :  { %1078 = vmatprep.mubr.msk.f32.mxu0 %vm351_vm1, %v337_v54 }
 0x22d   :  { %v338_v55 = vpop.trf.xlu0 }
 0x22e   :  { %1079 = vmatmul.mubr.msk.f32.gmra.mrb[2].mxu0 %vm351_vm1, %v338_v55 }
 0x231   :  { %v339_v56 = vpop.trf.xlu0 }
 0x232   :  { %1081 = vmatprep.mubr.msk.f32.mxu0 %vm351_vm1, %v339_v56 }
 0x235   :  { %v340_v57 = vpop.trf.xlu0 }
 0x236   :  { %1082 = vmatmul.mubr.msk.f32.gmra.mrb[4].mxu0 %vm351_vm1, %v340_v57 }
 0x239   :  { %v341_v49 = vpop.trf.xlu0 }
 0x23a   :  { %1084 = vmatprep.mubr.msk.f32.mxu0 %vm351_vm1, %v341_v49 }
 0x23d   :  { %v639_v50 = vpop.trf.xlu1  ;;  %v342_v58 = vpop.trf.xlu0 }
 0x23e   :  { %1101 = vmatprep.mubr.msk.f32.mxu1 %vm655_vm2, %v639_v50  ;;  %1085 = vmatmul.mubr.msk.f32.gmra.mrb[6].mxu0 %vm351_vm1, %v342_v58 }
 0x241   :  { %v640_v59 = vpop.trf.xlu1  ;;  %v343_v52 = vpop.trf.xlu0 }
 0x242   :  { %1102 = vmatmul.mubr.msk.f32.vlgmr.msra.gmra.mrb[0].mxu1 %vm655_vm2, %v640_v59  ;;  %1087 = vmatprep.mubr.msk.f32.mxu0 %vm351_vm1, %v343_v52 }
 0x245   :  { %v641_v60 = vpop.trf.xlu1  ;;  %v344_v61 = vpop.trf.xlu0 }
 0x246   :  { %1104 = vmatprep.mubr.msk.f32.mxu1 %vm655_vm2, %v641_v60  ;;  %1088 = vmatmul.mubr.msk.f32.gmra.mrb[8].mxu0 %vm351_vm1, %v344_v61  ;;  %v904_v61 = vadd.s32 40, %v1255_v12 }
 0x248   :  { %vm922_vm5 = vcmp.eq.s32.totalorder %v904_v61, %v1260_v14 }
 0x249   :  { %v642_v38 = vpop.trf.xlu1  ;;  %v345_v44 = vpop.trf.xlu0 }
 0x24a   :  { %1105 = vmatmul.mubr.msk.f32.gmra.mrb[2].mxu1 %vm655_vm2, %v642_v38  ;;  %1090 = vmatprep.mubr.msk.f32.mxu0 %vm351_vm1, %v345_v44 }
 0x24d   :  { %v643_v62 = vpop.trf.xlu1  ;;  %v346_v63 = vpop.trf.xlu0 }
 0x24e   :  { %1107 = vmatprep.mubr.msk.f32.mxu1 %vm655_vm2, %v643_v62  ;;  %1091 = vmatmul.mubr.msk.f32.gmra.mrb[10].mxu0 %vm351_vm1, %v346_v63  ;;  %v903_v63 = vadd.s32 32, %v1255_v12 }
 0x250   :  { %vm921_vm6 = vcmp.eq.s32.totalorder %v903_v63, %v1260_v14 }
 0x251   :  { %v644_v0 = vpop.trf.xlu1  ;;  %v347_v45 = vpop.trf.xlu0 }
 0x252   :  { %1108 = vmatmul.mubr.msk.f32.gmra.mrb[4].mxu1 %vm655_vm2, %v644_v0  ;;  %1093 = vmatprep.mubr.msk.f32.mxu0 %vm351_vm1, %v347_v45 }
 0x255   :  { %v645_v48 = vpop.trf.xlu1  ;;  %v348_v1 = vpop.trf.xlu0 }
 0x256   :  { %1110 = vmatprep.mubr.msk.f32.mxu1 %vm655_vm2, %v645_v48  ;;  %1094 = vmatmul.mubr.msk.f32.gmra.mrb[12].mxu0 %vm351_vm1, %v348_v1 }
 0x259   :  { %v646_v2 = vpop.trf.xlu1  ;;  %v349_v32 = vpop.trf.xlu0 }
 0x25a   :  { %1111 = vmatmul.mubr.msk.f32.gmra.mrb[6].mxu1 %vm655_vm2, %v646_v2  ;;  %1096 = vmatprep.mubr.msk.f32.mxu0 %vm351_vm1, %v349_v32 }
 0x25d   :  { %v647_v3 = vpop.trf.xlu1  ;;  %v350_v47 = vpop.trf.xlu0 }
 0x25e   :  { %1113 = vmatprep.mubr.msk.f32.mxu1 %vm655_vm2, %v647_v3  ;;  %1097 = vmatmul.mubr.msk.f32.gmra.mrb[14].mxu0 %vm351_vm1, %v350_v47 }
 0x261   :  { %v648_v4 = vpop.trf.xlu1 }
 0x262   :  { %1114 = vmatmul.mubr.msk.f32.gmra.mrb[8].mxu1 %vm655_vm2, %v648_v4 }
 0x265   :  { %v649_v5 = vpop.trf.xlu1 }
 0x266   :  { %1116 = vmatprep.mubr.msk.f32.mxu1 %vm655_vm2, %v649_v5 }
 0x269   :  { %v650_v6 = vpop.trf.xlu1 }
 0x26a   :  { %1117 = vmatmul.mubr.msk.f32.gmra.mrb[10].mxu1 %vm655_vm2, %v650_v6 }
 0x26d   :  { %v651_v7 = vpop.trf.xlu1 }
 0x26e   :  { %1119 = vmatprep.mubr.msk.f32.mxu1 %vm655_vm2, %v651_v7 }
 0x271   :  { %v652_v8 = vpop.trf.xlu1 }
 0x272   :  { %1120 = vmatmul.mubr.msk.f32.gmra.mrb[12].mxu1 %vm655_vm2, %v652_v8 }
 0x275   :  { %v653_v43 = vpop.trf.xlu1 }
 0x276   :  { %1122 = vmatprep.mubr.msk.f32.mxu1 %vm655_vm2, %v653_v43  ;;  %v906_v43 = vadd.s32 56, %v1255_v12 }
 0x278   :  { %vm924_vm7 = vcmp.eq.s32.totalorder %v906_v43, %v1260_v14 }
 0x279   :  { %v654_v9 = vpop.trf.xlu1 }
 0x27a   :  { %1123 = vmatmul.mubr.msk.f32.gmra.mrb[14].mxu1 %vm655_vm2, %v654_v9  ;;  %vm974_vm2 = vcmask 0  }
 0x2f9   :  { %v1077_v10 = vpop.f32.mrb[0].mxu0 }
 0x2fa   :  { %v466_v33 = vpop.f32.mrb[1].mxu0  ;;  %v608_v21 = vmul.f32 0.07692308, %v1077_v10 }
 0x2fb   :  { %v607_v18 = vmul.f32 0.07692308, %v466_v33 }
 0x301   :  { %v1080_v11 = vpop.f32.mrb[2].mxu0 }
 0x302   :  { %v476_v15 = vpop.f32.mrb[3].mxu0  ;;  %v610_v36 = vmul.f32 0.07692308, %v1080_v11  ;;  %v905_v11 = vadd.s32 48, %v1255_v12 }
 0x303   :  { %v609_v39 = vmul.f32 0.07692308, %v476_v15 }
 0x304   :  { %vm923_vm8 = vcmp.eq.s32.totalorder %v905_v11, %v1260_v14  ;;  %v914_v11 = vadd.s32 120, %v1255_v12 }
 0x306   :  { %vm932_vm15 = vcmp.eq.s32.totalorder %v914_v11, %v1260_v14 }
 0x309   :  { %v1083_v16 = vpop.f32.mrb[4].mxu0 }
 0x30a   :  { %v486_v17 = vpop.f32.mrb[5].mxu0  ;;  %v612_v58 = vmul.f32 0.07692308, %v1083_v16 }
 0x30b   :  { %v611_v52 = vmul.f32 0.07692308, %v486_v17 }
 0x311   :  { %v1086_v19 = vpop.f32.mrb[6].mxu0 }
 0x312   :  { %v496_v20 = vpop.f32.mrb[7].mxu0  ;;  %v614_v5 = vmul.f32 0.07692308, %v1086_v19 }
 0x313   :  { %v613_v7 = vmul.f32 0.07692308, %v496_v20 }
 0x315   :  { %v1103_v22 = vpop.f32.mrb[0].mxu1 }
 0x316   :  { %v854_v23 = vmul.f32 0.00591716, %v1103_v22  ;;  %v774_v25 = vpop.f32.mrb[1].mxu1 }
 0x317   :  { %v853_v26 = vmul.f32 0.00591716, %v774_v25 }
 0x318   :  { %v870_v27 = vsub.f32 %v608_v21, %v854_v23 }
 0x319   :  { %v869_v28 = vsub.f32 %v607_v18, %v853_v26  ;;  %v1395_v29 = vpop.f32.mrb[8].mxu0 }
 0x31a   :  { %v886_v30 = vmul.f32 %v870_v27, %v870_v27  ;;  %v1399_v31 = vpop.f32.mrb[9].mxu0  ;;  %v616_v25 = vmul.f32 0.07692308, %v1395_v29 }
 0x31b   :  { %v885_v34 = vmul.f32 %v869_v28, %v869_v28  ;;  %v615_v27 = vmul.f32 0.07692308, %v1399_v31 }
 0x31c   :  { %v934_v35 = vsel %vm918_vm0, 0.0, %v886_v30  ;;  %vm919_vm0 = vcmp.eq.s32.totalorder %v901_v51, %v1260_v14  ;;  %v908_v30 = vadd.s32 72, %v1255_v12 }
 0x31d   :  { %v933_v37 = vsel %vm917_vm3, 0.0, %v885_v34  ;;  %v1106_v40 = vpop.f32.mrb[2].mxu1 }
 0x31e   :  { %v949_v24 = vadd.f32 %v934_v35, %v933_v37  ;;  %v856_v42 = vmul.f32 0.00591716, %v1106_v40  ;;  %v784_v46 = vpop.f32.mrb[3].mxu1  ;;  %v907_v37 = vadd.s32 64, %v1255_v12  ;;  %vm926_vm9 = vcmp.eq.s32.totalorder %v908_v30, %v1260_v14 }
 0x31f   :  { %v855_v53 = vmul.f32 0.00591716, %v784_v46 }
 0x320   :  { %v872_v54 = vsub.f32 %v610_v36, %v856_v42  ;;  %vm925_vm10 = vcmp.eq.s32.totalorder %v907_v37, %v1260_v14 }
 0x321   :  { %v871_v55 = vsub.f32 %v609_v39, %v855_v53  ;;  %v1407_v56 = vpop.f32.mrb[10].mxu0 }
 0x322   :  { %v888_v13 = vmul.f32 %v872_v54, %v872_v54  ;;  %v1410_v57 = vpop.f32.mrb[11].mxu0  ;;  %v618_v31 = vmul.f32 0.07692308, %v1407_v56 }
 0x323   :  { %v887_v49 = vmul.f32 %v871_v55, %v871_v55  ;;  %v617_v53 = vmul.f32 0.07692308, %v1410_v57  ;;  %v910_v55 = vadd.s32 88, %v1255_v12 }
 0x324   :  { %v936_v50 = vsel %vm920_vm4, 0.0, %v888_v13 }
 0x325   :  { %v935_v59 = vsel %vm919_vm0, 0.0, %v887_v49  ;;  %v1109_v60 = vpop.f32.mrb[4].mxu1  ;;  %vm928_vm11 = vcmp.eq.s32.totalorder %v910_v55, %v1260_v14 }
 0x326   :  { %v950_v38 = vadd.f32 %v949_v24, %v935_v59  ;;  %v858_v44 = vmul.f32 0.00591716, %v1109_v60  ;;  %v794_v62 = vpop.f32.mrb[5].mxu1 }
 0x327   :  { %v857_v0 = vmul.f32 0.00591716, %v794_v62 }
 0x328   :  { %v874_v45 = vsub.f32 %v612_v58, %v858_v44  ;;  %v951_v48 = vadd.f32 %v950_v38, %v936_v50  ;;  %v909_v58 = vadd.s32 80, %v1255_v12 }
 0x329   :  { %v873_v1 = vsub.f32 %v611_v52, %v857_v0  ;;  %v1095_v2 = vpop.f32.mrb[12].mxu0 }
 0x32a   :  { %v890_v32 = vmul.f32 %v874_v45, %v874_v45  ;;  %v526_v3 = vpop.f32.mrb[13].mxu0  ;;  %vm927_vm12 = vcmp.eq.s32.totalorder %v909_v58, %v1260_v14  ;;  %v620_v57 = vmul.f32 0.07692308, %v1095_v2  ;;  %v912_v45 = vadd.s32 104, %v1255_v12 }
 0x32b   :  { %v889_v47 = vmul.f32 %v873_v1, %v873_v1  ;;  %v619_v63 = vmul.f32 0.07692308, %v526_v3 }
 0x32c   :  { %v938_v4 = vsel %vm922_vm5, 0.0, %v890_v32  ;;  %vm930_vm13 = vcmp.eq.s32.totalorder %v912_v45, %v1260_v14 }
 0x32d   :  { %v937_v6 = vsel %vm921_vm6, 0.0, %v889_v47  ;;  %v1112_v8 = vpop.f32.mrb[6].mxu1  ;;  %v911_v47 = vadd.s32 96, %v1255_v12 }
 0x32e   :  { %v952_v9 = vadd.f32 %v951_v48, %v937_v6  ;;  %v860_v10 = vmul.f32 0.00591716, %v1112_v8  ;;  %v804_v33 = vpop.f32.mrb[7].mxu1 }
 0x32f   :  { %v859_v15 = vmul.f32 0.00591716, %v804_v33  ;;  %vm929_vm14 = vcmp.eq.s32.totalorder %v911_v47, %v1260_v14 }
 0x330   :  { %v876_v16 = vsub.f32 %v614_v5, %v860_v10  ;;  %v953_v17 = vadd.f32 %v952_v9, %v938_v4 }
 0x331   :  { %v875_v21 = vsub.f32 %v613_v7, %v859_v15  ;;  %v1098_v18 = vpop.f32.mrb[14].mxu0 }
 0x332   :  { %v892_v22 = vmul.f32 %v876_v16, %v876_v16  ;;  %v536_v19 = vpop.f32.mrb[15].mxu0  ;;  %v622_v3 = vmul.f32 0.07692308, %v1098_v18 }
 0x333   :  { %v891_v20 = vmul.f32 %v875_v21, %v875_v21  ;;  %v621_v10 = vmul.f32 0.07692308, %v536_v19  ;;  %v913_v21 = vadd.s32 112, %v1255_v12 }
 0x334   :  { %v940_v23 = vsel %vm924_vm7, 0.0, %v892_v22 }
 0x335   :  { %v939_v26 = vsel %vm923_vm8, 0.0, %v891_v20  ;;  %v1115_v28 = vpop.f32.mrb[8].mxu1  ;;  %vm931_vm1 = vcmp.eq.s32.totalorder %v913_v21, %v1260_v14 }
 0x336   :  { %v954_v34 = vadd.f32 %v953_v17, %v939_v26  ;;  %v862_v35 = vmul.f32 0.00591716, %v1115_v28  ;;  %v814_v36 = vpop.f32.mrb[9].mxu1 }
 0x337   :  { %v861_v39 = vmul.f32 0.00591716, %v814_v36 }
 0x338   :  { %v878_v40 = vsub.f32 %v616_v25, %v862_v35  ;;  %v955_v41 = vadd.f32 %v954_v34, %v940_v23 }
 0x339   :  { %v877_v24 = vsub.f32 %v615_v27, %v861_v39 }
 0x33a   :  { %v894_v42 = vmul.f32 %v878_v40, %v878_v40 }
 0x33b   :  { %v893_v29 = vmul.f32 %v877_v24, %v877_v24 }
 0x33c   :  { %v942_v46 = vsel %vm926_vm9, 0.0, %v894_v42 }
 0x33d   :  { %v941_v51 = vsel %vm925_vm10, 0.0, %v893_v29  ;;  %v1118_v54 = vpop.f32.mrb[10].mxu1 }
 0x33e   :  { %v956_v13 = vadd.f32 %v955_v41, %v941_v51  ;;  %v864_v49 = vmul.f32 0.00591716, %v1118_v54  ;;  %v824_v50 = vpop.f32.mrb[11].mxu1 }
 0x33f   :  { %v863_v59 = vmul.f32 0.00591716, %v824_v50 }
 0x340   :  { %v880_v52 = vsub.f32 %v618_v31, %v864_v49  ;;  %v957_v60 = vadd.f32 %v956_v13, %v942_v46 }
 0x341   :  { %v879_v61 = vsub.f32 %v617_v53, %v863_v59 }
 0x342   :  { %v896_v38 = vmul.f32 %v880_v52, %v880_v52 }
 0x343   :  { %v895_v56 = vmul.f32 %v879_v61, %v879_v61 }
 0x344   :  { %v944_v44 = vsel %vm928_vm11, 0.0, %v896_v38 }
 0x345   :  { %v943_v62 = vsel %vm927_vm12, 0.0, %v895_v56  ;;  %v1121_v0 = vpop.f32.mrb[12].mxu1 }
 0x346   :  { %v958_v48 = vadd.f32 %v957_v60, %v943_v62  ;;  %v866_v1 = vmul.f32 0.00591716, %v1121_v0  ;;  %v834_v32 = vpop.f32.mrb[13].mxu1 }
 0x347   :  { %v865_v4 = vmul.f32 0.00591716, %v834_v32 }
 0x348   :  { %v882_v5 = vsub.f32 %v620_v57, %v866_v1  ;;  %v959_v6 = vadd.f32 %v958_v48, %v944_v44 }
 0x349   :  { %v881_v7 = vsub.f32 %v619_v63, %v865_v4 }
 0x34a   :  { %v898_v8 = vmul.f32 %v882_v5, %v882_v5 }
 0x34b   :  { %v897_v2 = vmul.f32 %v881_v7, %v881_v7 }
 0x34c   :  { %v946_v43 = vsel %vm930_vm13, 0.0, %v898_v8 }
 0x34d   :  { %v945_v9 = vsel %vm929_vm14, 0.0, %v897_v2  ;;  %v1124_v33 = vpop.f32.mrb[14].mxu1 }
 0x34e   :  { %v960_v15 = vadd.f32 %v959_v6, %v945_v9  ;;  %v868_v16 = vmul.f32 0.00591716, %v1124_v33  ;;  %v844_v17 = vpop.f32.mrb[15].mxu1 }
 0x34f   :  { %v867_v22 = vmul.f32 0.00591716, %v844_v17 }
 0x350   :  { %v884_v20 = vsub.f32 %v622_v3, %v868_v16  ;;  %v961_v23 = vadd.f32 %v960_v15, %v946_v43 }
 0x351   :  { %v883_v25 = vsub.f32 %v621_v10, %v867_v22 }
 0x352   :  { %v900_v26 = vmul.f32 %v884_v20, %v884_v20 }
 0x353   :  { %v899_v18 = vmul.f32 %v883_v25, %v883_v25 }
 0x354   :  { %v948_v27 = vsel %vm932_vm15, 0.0, %v900_v26 }
 0x355   :  { %v947_v19 = vsel %vm931_vm1, 0.0, %v899_v18 }
 0x356   :  { %v962_v28 = vadd.f32 %v961_v23, %v947_v19 }
 0x358   :  { %v963_v30 = vadd.f32 %v962_v28, %v948_v27 }
 0x35a   :  { %964 = vadd.xlane.f32.xlu0 %v963_v30 }
 0x3e7   :  { %v965_v34 = vpop.xlane.xlu0 %964 }
 0x3e8   :  { %v966_v35 = vrot.slane %v965_v34, 4 }
 0x3ea   :  { %v967_v36 = vadd.f32 %v966_v35, %v965_v34 }
 0x3ec   :  { %v968_v37 = vrot.slane %v967_v36, 2 }
 0x3ee   :  { %v969_v12 = vadd.f32 %v968_v37, %v967_v36 }
 0x3f0   :  { %v970_v39 = vrot.slane %v969_v12, 1 }
 0x3f2   :  { %v971_v40 = vadd.f32 %v970_v39, %v969_v12 }
 0x3f4   :  { %1139 = vpush %v971_v40 }
 0x425   :  { %s1140_s25 = spop %1139 }
 0x426   :  { %v973_v14 = vstv %s1140_s25 }
 0x427   :  { %975 = vst.msk [vmem:[#allocation7] sm:$0x1] %vm974_vm2, %v973_v14 }
 0x428   :  { %1198 = shalt.err (!%p1195_p12)
}
 0x429   :  { %s1199_s30 = scalar_lea.hbm %s1454_s2, 16 }
 0x42a   :  { %p1200_p13 = scmp.ne.s32.totalorder %s1454_s2, %s1199_s30  ;;  %p1203_p0 = scmp.lt.u32.totalorder %s1199_s30, %s1454_s2 }
 0x42c   :  { %p1205_p1 = pnand %p1203_p0, %p1200_p13 }
 0x42e   :  { %1208 = shalt.err (!%p1205_p1)
}
 0x42f   :  { %985 = dma.vmem_to_hbm [thread:$0]  %s983_s1, 16, %s1454_s2, [#allocation6]  }
 0x430   :  { %1211 = dma.done.wait [#allocation6], 16  }
 0x431   :  { %1212 = vsyncadd [#allocation6], 4294967280 }
 0x432   :  { %989 = vsyncpa [#allocation5], 1 }
 0x433   :  { %990 = vsyncpa [#allocation6], 1 }

</bundles_post_ra>
